<compile_context>
chip_gen: v7x
topology: tpu7x:2x2x1
jax: 0.10.0
libtpu: 0.0.40
codegen_flags: <defaults>
</compile_context>

<pallas_src>
import math

import jax
import jax.numpy as jnp
from jax.experimental import pallas as pl
from jax.experimental.pallas import tpu as pltpu


def _round_up(x, m):
    return ((x + m - 1) // m) * m


def _sublane_multiple(dtype):
    # 8 sublanes for 32-bit, 16 for 16-bit, 32 for 8-bit packed dtypes.
    bits = jnp.dtype(dtype).itemsize * 8
    return max(8, 256 // bits)


# ---------------------------------------------------------------------------
# Fast path: K and N each fit in a single VMEM-resident block.
# ---------------------------------------------------------------------------
def _small_kernel(x_ref, w_ref, b_ref, o_ref):
    # x_ref: (tm, K)   w_ref: (N, K) resident   b_ref: (1, N) resident
    # o_ref: (tm, N)
    acc = jax.lax.dot_general(
        x_ref[...], w_ref[...],
        dimension_numbers=(((1,), (1,)), ((), ())),   # x @ W^T on the MXU
        preferred_element_type=jnp.float32)
    o_ref[...] = (acc + b_ref[...].astype(jnp.float32)).astype(o_ref.dtype)


def _linear_small(x2, weight, bias):
    M, K = x2.shape
    N = weight.shape[0]
    sub = _sublane_multiple(x2.dtype)

    tm = min(1024, _round_up(M, sub))
    Mp = _round_up(M, tm)
    x_p = x2 if Mp == M else jnp.pad(x2, ((0, Mp - M), (0, 0)))
    b2 = bias.reshape(1, N)

    out = pl.pallas_call(
        _small_kernel,
        out_shape=jax.ShapeDtypeStruct((Mp, N), x2.dtype),
        grid_spec=pltpu.PrefetchScalarGridSpec(
            num_scalar_prefetch=0,
            grid=(Mp // tm,),
            in_specs=[
                pl.BlockSpec((tm, K), lambda i: (i, 0)),   # x: stream once, full K
                pl.BlockSpec((N, K), lambda i: (0, 0)),    # weight: VMEM-resident
                pl.BlockSpec((1, N), lambda i: (0, 0)),    # bias: VMEM-resident
            ],
            out_specs=pl.BlockSpec((tm, N), lambda i: (i, 0)),
        ),
        compiler_params=pltpu.CompilerParams(
            dimension_semantics=("parallel",)),
    )(x_p, weight, b2)

    return out if Mp == M else out[:M]


# ---------------------------------------------------------------------------
# General fallback: large K and/or N -> 3-D tiled matmul with f32 accumulator.
# ---------------------------------------------------------------------------
def _general_kernel(x_ref, w_ref, b_ref, o_ref, acc_ref):
    k = pl.program_id(2)

    @pl.when(k == 0)
    def _():
        acc_ref[...] = jnp.zeros_like(acc_ref)

    acc_ref[...] += jax.lax.dot_general(
        x_ref[...], w_ref[...],
        dimension_numbers=(((1,), (1,)), ((), ())),   # (tm,tk) x (tn,tk) -> (tm,tn)
        preferred_element_type=jnp.float32)

    @pl.when(k == pl.num_programs(2) - 1)
    def _():
        o_ref[...] = (acc_ref[...]
                      + b_ref[...].astype(jnp.float32)).astype(o_ref.dtype)


def _linear_general(x2, weight, bias, *, tm=512, tn=512, tk=512):
    M, K = x2.shape
    N = weight.shape[0]
    sub = _sublane_multiple(x2.dtype)

    tm = min(tm, _round_up(M, sub))
    Mp = _round_up(M, tm)
    Np = _round_up(N, tn)
    Kp = _round_up(K, tk)

    x_p = x2 if (Mp == M and Kp == K) else jnp.pad(x2, ((0, Mp - M), (0, Kp - K)))
    w_p = (weight if (Np == N and Kp == K)
           else jnp.pad(weight, ((0, Np - N), (0, Kp - K))))
    b_p = (bias if Np == N else jnp.pad(bias, ((0, Np - N),))).reshape(1, Np)

    out = pl.pallas_call(
        _general_kernel,
        out_shape=jax.ShapeDtypeStruct((Mp, Np), x2.dtype),
        grid_spec=pltpu.PrefetchScalarGridSpec(
            num_scalar_prefetch=0,
            grid=(Mp // tm, Np // tn, Kp // tk),
            in_specs=[
                pl.BlockSpec((tm, tk), lambda i, j, k: (i, k)),   # x tile
                pl.BlockSpec((tn, tk), lambda i, j, k: (j, k)),   # weight (N,K) tile
                pl.BlockSpec((1, tn), lambda i, j, k: (0, j)),    # bias tile
            ],
            out_specs=pl.BlockSpec((tm, tn), lambda i, j, k: (i, j)),
            scratch_shapes=[pltpu.VMEM((tm, tn), jnp.float32)],
        ),
        compiler_params=pltpu.CompilerParams(
            dimension_semantics=("parallel", "parallel", "arbitrary"),
            vmem_limit_bytes=32 * 1024 * 1024),
    )(x_p, w_p, b_p)

    if Mp != M or Np != N:
        out = out[:M, :N]
    return out


# ---------------------------------------------------------------------------
# Public forward: y = x @ weight.T + bias   (PyTorch nn.Linear convention)
# ---------------------------------------------------------------------------
def ordinal_embedding(x, weight, bias):
    """PyTorch OrdinalEmbedding.forward: nn.Linear(input_dim, embedding_dim)(x).

    x:      (..., input_dim)
    weight: (embedding_dim, input_dim)
    bias:   (embedding_dim,)
    """
    *lead, K = x.shape
    N, K_w = weight.shape
    assert K_w == K, (K_w, K)
    M = math.prod(lead) if lead else 1

    if M == 0:
        return jnp.zeros((*lead, N), dtype=x.dtype)

    x2 = x.reshape(M, K)

    # Typical OrdinalEmbedding regime: small K, small N -> collapsed-grid path.
    if K <= 1024 and N <= 1024:
        out = _linear_small(x2, weight, bias)
    else:
        out = _linear_general(x2, weight, bias)

    return out.reshape(*lead, N)


def ordinal_embedding_ref(x, weight, bias):
    """Pure-JAX reference (for correctness check)."""
    return jnp.einsum("...k,nk->...n", x, weight) + bias


if __name__ == "__main__":
    key = jax.random.PRNGKey(0)
    k_x, k_w, k_b = jax.random.split(key, 3)

    # Small shapes consistent with the module: batch=2, seq=8, input_dim=32,
    # embedding_dim=64.
    batch, seq, input_dim, embedding_dim = 2, 8, 32, 64
    x = jax.random.normal(k_x, (batch, seq, input_dim), dtype=jnp.float32)

    # Deterministic parameter init matching nn.Linear's default
    # (uniform(-1/sqrt(fan_in), 1/sqrt(fan_in)) for weight and bias).
    bound = 1.0 / math.sqrt(input_dim)
    weight = jax.random.uniform(k_w, (embedding_dim, input_dim),
                                minval=-bound, maxval=bound, dtype=jnp.float32)
    bias = jax.random.uniform(k_b, (embedding_dim,),
                              minval=-bound, maxval=bound, dtype=jnp.float32)

    out = ordinal_embedding(x, weight, bias)
    out = jax.block_until_ready(out)

    ref = ordinal_embedding_ref(x, weight, bias)
    assert out.shape == (batch, seq, embedding_dim)
    assert jnp.allclose(out, ref, rtol=1e-5, atol=1e-5), \
        float(jnp.max(jnp.abs(out - ref)))

    print("KERNEL_OK")
</pallas_src>

<mosaic_0001>
module attributes {stable_mosaic.version = 11 : i64} {
  func.func @_small_kernel(%arg0: i32, %arg1: memref<16x32xf32, #tpu.memory_space<vmem>>, %arg2: memref<64x32xf32, #tpu.memory_space<vmem>>, %arg3: memref<1x64xf32, #tpu.memory_space<vmem>>, %arg4: memref<16x64xf32, #tpu.memory_space<vmem>>) attributes {dimension_semantics = [#tpu.dimension_semantics<parallel>], iteration_bounds = array<i64: 1>, scalar_prefetch = 0 : i64, scratch_operands = 0 : i64, tpu.core_type = #tpu.core_type<tc>, window_params = [{transform_indices = @transform_0, window_bounds = array<i64: 16, 32>}, {pipeline_mode = #tpu.pipeline_mode<synchronous>, transform_indices = @transform_1, window_bounds = array<i64: 64, 32>}, {pipeline_mode = #tpu.pipeline_mode<synchronous>, transform_indices = @transform_2, window_bounds = array<i64: 1, 64>}, {transform_indices = @transform_3, window_bounds = array<i64: 16, 64>}]} {
    %c0 = arith.constant 0 : index
    %c0_0 = arith.constant 0 : index
    %0 = vector.load %arg1[%c0, %c0_0] : memref<16x32xf32, #tpu.memory_space<vmem>>, vector<16x32xf32>
    %c0_1 = arith.constant 0 : index
    %c0_2 = arith.constant 0 : index
    %1 = vector.load %arg2[%c0_1, %c0_2] : memref<64x32xf32, #tpu.memory_space<vmem>>, vector<64x32xf32>
    %cst = arith.constant dense<0.000000e+00> : vector<16x64xf32>
    %2 = tpu.matmul %0, %1, %cst {dimension_numbers = #tpu.dot_dimension_numbers<[1], [1], [0], [0], [0, 0, 1, 0], [], []>} : vector<16x32xf32>, vector<64x32xf32>, vector<16x64xf32> -> vector<16x64xf32>
    %c0_3 = arith.constant 0 : index
    %c0_4 = arith.constant 0 : index
    %3 = vector.load %arg3[%c0_3, %c0_4] : memref<1x64xf32, #tpu.memory_space<vmem>>, vector<1x64xf32>
    %4 = vector.broadcast %3 : vector<1x64xf32> to vector<16x64xf32>
    %5 = arith.addf %2, %4 : vector<16x64xf32>
    %c0_5 = arith.constant 0 : index
    %c0_6 = arith.constant 0 : index
    %6 = vector.load %arg4[%c0_5, %c0_6] : memref<16x64xf32, #tpu.memory_space<vmem>>, vector<16x64xf32>
    tpu.vector_store %arg4[%c0_5, %c0_6], %5 {strides = array<i32>} : memref<16x64xf32, #tpu.memory_space<vmem>>, vector<16x64xf32>,
    return
  }
  func.func @transform_0(%arg0: i32) -> (i32, i32) {
    %c0_i32 = arith.constant 0 : i32
    %c0_i32_0 = arith.constant 0 : i32
    return %arg0, %c0_i32 : i32, i32
  }
  func.func @transform_1(%arg0: i32) -> (i32, i32) {
    %c0_i32 = arith.constant 0 : i32
    %c0_i32_0 = arith.constant 0 : i32
    %c0_i32_1 = arith.constant 0 : i32
    return %c0_i32, %c0_i32_0 : i32, i32
  }
  func.func @transform_2(%arg0: i32) -> (i32, i32) {
    %c0_i32 = arith.constant 0 : i32
    %c0_i32_0 = arith.constant 0 : i32
    %c0_i32_1 = arith.constant 0 : i32
    return %c0_i32, %c0_i32_0 : i32, i32
  }
  func.func @transform_3(%arg0: i32) -> (i32, i32) {
    %c0_i32 = arith.constant 0 : i32
    %c0_i32_0 = arith.constant 0 : i32
    return %arg0, %c0_i32 : i32, i32
  }
}

</mosaic_0001>

<bundles_post_ra>
// kernel: tpu_custom_call.1
= control target key start
LH: loop header
LB: loop body
LE: loop exit
PB: predicated region body
PF: predicated region fallthrough
CT: control target
= control target key end

     0   :  { %vm32_vm0 = vcmask 261120   ;;  %s340_s0 = inlined_call_operand.vmem [shape: f32[16,32], index: 0, kind: input, shape index: {}]   ;;  %s341_s1 = inlined_call_operand.vmem [shape: f32[64,32], index: 1, kind: input, shape index: {}]   ;;  %s342_s2 = inlined_call_operand.vmem [shape: f32[1,64], index: 2, kind: input, shape index: {}]   ;;  %s343_s3 = inlined_call_operand.hbm [shape: f32[16,64], index: 3, kind: output, shape index: {}]  }
   0x1   :  { %v17_v0 = vld [vmem:[%s341_s1] sm:$0xff]  ;;  %v18_v1 = vld [vmem:[%s341_s1 + $0x8] sm:$0xff]  ;;  %v19_v2 = vld [vmem:[%s341_s1 + $0x10] sm:$0xff] }
   0x2   :  { %v197_v3 = vpack.c.bf16 %v18_v1, %v17_v0  ;;  %vm282_vm1 = vmpackc.low %vm32_vm0, %vm32_vm0  ;;  %v20_v5 = vld [vmem:[%s341_s1 + $0x18] sm:$0xff]  ;;  %v15_v7 = vld [vmem:[%s340_s0] sm:$0xff] }
   0x3   :  { %v203_v6 = vpack.c.bf16 %v20_v5, %v19_v2 }
   0x4   :  { %199 = vmatprep.subr.msk.bf16.mxu0 %vm282_vm1, %v197_v3 }
   0x5   :  { %8 = vsyncpa [#allocation3], 0  ;;  %202 = vmatpush3.bf16.xpose.msk.msra.mxu0 %vm282_vm1, %v197_v3  ;;  %194 = vmatprep.mubr.msk.f32.mxu0 %vm32_vm0, %v15_v7  ;;  %v21_v8 = vld [vmem:[%s341_s1 + $0x20] sm:$0xff]  ;;  %v22_v9 = vld [vmem:[%s341_s1 + $0x28] sm:$0xff]  ;;  %vm138_vm2 = vcmask 523264  }
   0x6   :  { %205 = vmatprep.subr.msk.bf16.mxu0 %vm282_vm1, %v203_v6  ;;  %v209_v10 = vpack.c.bf16 %v22_v9, %v21_v8  ;;  %v23_v11 = vld [vmem:[%s341_s1 + $0x30] sm:$0xff]  ;;  %v24_v12 = vld [vmem:[%s341_s1 + $0x38] sm:$0xff]  ;;  %v16_v14 = vld [vmem:[%s340_s0 + $0x8] sm:$0xff]  ;;  %s248_s1 = smov [#allocation2]  }
   0x7   :  { %v215_v13 = vpack.c.bf16 %v24_v12, %v23_v11  ;;  %v157_v15 = vld [vmem:[%s342_s2] ss:$0 sm:$0xff]  ;;  %s146_s7 = sshll.u32 %s248_s1, 4  ;;  %s147_s7 = int_to_ptr.vmem [resolvable:$true] %s146_s7 }
   0x8   :  { %s224_s8 = scalar_lea.vmem %s147_s7, 256  ;;  %p229_p1 = scmp.lt.s32.totalorder %s147_s7, %s147_s7 }
   0x9   :  { %p225_p0 = scmp.ne.s32.totalorder %s147_s7, %s224_s8  ;;  %p230_p2 = scmp.lt.s32.totalorder %s224_s8, %s224_s8 }
   0xb   :  { %p231_p3 = por %p230_p2, %p229_p1 }
   0xd   :  { %208 = vmatpush3.bf16.xpose.msk.msra.mxu0 %vm282_vm1, %v203_v6  ;;  %p232_p4 = pnand %p231_p3, %p225_p0 }
   0xe   :  { %211 = vmatprep.subr.msk.bf16.mxu0 %vm282_vm1, %v209_v10 }
  0x15   :  { %214 = vmatpush3.bf16.xpose.msk.msra.mxu0 %vm282_vm1, %v209_v10 }
  0x16   :  { %217 = vmatprep.subr.msk.bf16.mxu0 %vm282_vm1, %v215_v13 }
  0x1d   :  { %220 = vmatpush3.bf16.xpose.msk.msra.mxu0 %vm282_vm1, %v215_v13 }
  0x24   :  { %195 = vmatmul.mubr.msk.f32.vlgmr.msra.gmra.mrb[0].mxu0 %vm32_vm0, %v16_v14 }
  0xf7   :  { %v196_v16 = vpop.f32.mrb[0].mxu0 }
  0xf8   :  { %v135_v17 = vadd.f32 %v196_v16, %v157_v15  ;;  %v129_v18 = vpop.f32.mrb[1].mxu0 }
  0xf9   :  { %v130_v19 = vadd.f32 %v157_v15, %v129_v18 }
  0xfa   :  { %140 = vst.msk [vmem:[#allocation2 + $0x8] sm:$0xff] %vm138_vm2, %v135_v17 }
  0xfb   :  { %139 = vst.msk [vmem:[#allocation2] sm:$0xff] %vm138_vm2, %v130_v19 }
  0xfc   :  { %235 = shalt.err (!%p232_p4)
}
  0xfd   :  { %s236_s2 = scalar_lea.hbm %s343_s3, 256 }
  0xfe   :  { %p237_p5 = scmp.ne.s32.totalorder %s343_s3, %s236_s2  ;;  %p240_p6 = scmp.lt.u32.totalorder %s236_s2, %s343_s3 }
 0x100   :  { %p242_p7 = pnand %p240_p6, %p237_p5 }
 0x102   :  { %245 = shalt.err (!%p242_p7)
}
 0x103   :  { %s249_s14 = smov 128   ;;  %s250_s15 = smov 8  }
 0x104   :  { %152 = dma.vmem_to_hbm [thread:$0]  %s147_s7, 256, %s343_s3, [#allocation3], %s249_s14, %s249_s14, %s250_s15  }
 0x105   :  { %246 = dma.done.wait [#allocation3], 256  }
 0x106   :  { %247 = vsyncadd [#allocation3], 4294967040 }
 0x107   :  { %156 = vsyncpa [#allocation3], 1 }

</bundles_post_ra>
